<compile_context>
chip_gen: v5e
topology: v5e:2x2
jax: 0.10.0
libtpu: 0.0.40
codegen_flags: <defaults>
</compile_context>

<pallas_src>
import jax
import jax.numpy as jnp
from jax.experimental import pallas as pl
from jax.experimental.pallas import tpu as pltpu


def _chamfer_kernel(f_ref, gT_ref, fn2_ref, gn2_ref, f2g_ref, g2f_ref):
    """One (TN, TM) tile of the pairwise squared-distance matrix.

    f_ref  : (TN, C)   f tile (native dtype)
    gT_ref : (C, TM)   transposed g tile (native dtype)
    fn2_ref: (TN, 1)   ||f||^2 (f32)
    gn2_ref: (1, TM)   ||g||^2 (f32)
    f2g_ref: (TN, 1)   running min over the M grid axis (resident output block)
    g2f_ref: (1, TM)   per-(n, m)-tile column mins
    """
    m = pl.program_id(2)

    # Fold the -2 into the tiny (TN, C) LHS tile (exact: power-of-two scale),
    # keep the MXU operands in their native dtype, accumulate in f32.
    lhs = (f_ref[...] * -2.0).astype(f_ref.dtype)
    dist = jnp.dot(lhs, gT_ref[...], preferred_element_type=jnp.float32)
    dist = dist + fn2_ref[...]          # + ||f||^2, (TN, 1) broadcast
    dist = dist + gn2_ref[...]          # + ||g||^2, (1, TM) broadcast

    # g -> f direction: column mins of this tile; combined across N tiles in JAX.
    g2f_ref[...] = jnp.min(dist, axis=0, keepdims=True)

    # f -> g direction: running row-min across the (innermost, "arbitrary") M axis.
    row_min = jnp.min(dist, axis=1, keepdims=True)

    @pl.when(m == 0)
    def _():
        f2g_ref[...] = row_min

    @pl.when(m > 0)
    def _():
        f2g_ref[...] = jnp.minimum(f2g_ref[...], row_min)


def _pick_tile(dim, cap):
    """Largest tile <= cap that evenly divides dim, preferring 256/128 multiples."""
    if dim <= cap:
        return dim
    for align in (256, 128, 8, 1):
        t = (cap // align) * align
        while t >= align:
            if dim % t == 0:
                return t
            t -= align
    return dim


def _vmem_limit_bytes():
    # Raise the default scoped VMEM limit (16/32 MiB) but stay well inside
    # physical VMEM on every generation (v5e/v6e: 128 MiB, v7x: 64 MiB per TC).
    try:
        cap = pltpu.get_tpu_info().vmem_capacity_bytes
    except Exception:
        cap = 64 * 1024 * 1024  # conservative fallback (v7x-sized)
    return int(min(cap * 3 // 4, 96 * 1024 * 1024))


def chamfer_loss(f, f_, *, tile_n=1024, tile_m=1024):
    """Chamfer loss matching ChamferLoss.forward semantics.

    f  : (B, N, C), f_ : (B, M, C)
    returns mean_b( mean_n min_m d(f_n, g_m) + mean_m min_n d(f_n, g_m) )
    """
    if f.shape[1] == 0:
        # PyTorch module returns 0 here; keep it a typed f32 scalar.
        return jnp.zeros((), jnp.float32)

    B, N, C = f.shape
    _, M, _ = f_.shape

    TN = _pick_tile(N, tile_n)
    TM = _pick_tile(M, tile_m)
    n_tiles = N // TN
    m_tiles = M // TM

    # Lane-dense RHS so the in-kernel dot is a plain (TN, C) x (C, TM) matmul.
    gT = jnp.transpose(f_, (0, 2, 1))                                   # (B, C, M)
    # Squared norms precomputed outside the kernel (C is tiny; the kernel keeps
    # only dense broadcast-adds on the (TN, TM) tile).
    fn2 = jnp.sum(f.astype(jnp.float32) ** 2, axis=-1, keepdims=True)   # (B, N, 1)
    gn2 = jnp.sum(f_.astype(jnp.float32) ** 2, axis=-1)[:, None, :]     # (B, 1, M)

    f2g, g2f_part = pl.pallas_call(
        _chamfer_kernel,
        out_shape=(
            jax.ShapeDtypeStruct((B, N, 1), jnp.float32),
            jax.ShapeDtypeStruct((B, n_tiles, 1, M), jnp.float32),
        ),
        grid_spec=pltpu.PrefetchScalarGridSpec(
            num_scalar_prefetch=0,
            grid=(B, n_tiles, m_tiles),
            in_specs=[
                pl.BlockSpec((pl.Squeezed(), TN, C), lambda b, n, m: (b, n, 0)),
                pl.BlockSpec((pl.Squeezed(), C, TM), lambda b, n, m: (b, 0, m)),
                pl.BlockSpec((pl.Squeezed(), TN, 1), lambda b, n, m: (b, n, 0)),
                pl.BlockSpec((pl.Squeezed(), 1, TM), lambda b, n, m: (b, 0, m)),
            ],
            out_specs=(
                pl.BlockSpec((pl.Squeezed(), TN, 1), lambda b, n, m: (b, n, 0)),
                pl.BlockSpec((pl.Squeezed(), pl.Squeezed(), 1, TM),
                             lambda b, n, m: (b, n, 0, m)),
            ),
        ),
        compiler_params=pltpu.CompilerParams(
            dimension_semantics=("parallel", "parallel", "arbitrary"),
            vmem_limit_bytes=_vmem_limit_bytes(),
        ),
    )(f, gT, fn2, gn2)

    # Tiny epilogue reductions in plain JAX (O(B*N) and O(B*n_tiles*M)).
    f2g_mean = jnp.mean(f2g[:, :, 0], axis=1)      # (B,)
    g2f = jnp.min(g2f_part, axis=1)[:, 0, :]       # (B, M): min over N tiles
    g2f_mean = jnp.mean(g2f, axis=1)               # (B,)
    return jnp.mean(f2g_mean + g2f_mean)


def _chamfer_ref(f, f_):
    """Pure-JAX reference (mirrors square_distance + mins + means)."""
    f = f.astype(jnp.float32)
    f_ = f_.astype(jnp.float32)
    dist = -2.0 * jnp.einsum("bnc,bmc->bnm", f, f_)
    dist = dist + jnp.sum(f ** 2, axis=-1)[:, :, None]
    dist = dist + jnp.sum(f_ ** 2, axis=-1)[:, None, :]
    f2f_ = jnp.min(dist, axis=2)
    f_2f = jnp.min(dist, axis=1)
    d = jnp.mean(f2f_, axis=1) + jnp.mean(f_2f, axis=1)
    return jnp.mean(d)


if __name__ == "__main__":
    key = jax.random.PRNGKey(0)
    k1, k2, k3, k4 = jax.random.split(key, 4)

    # Small case (single tile per batch element), matches the module's layout.
    B, N, M, C = 2, 16, 24, 3
    f = jax.random.normal(k1, (B, N, C), dtype=jnp.float32)
    g = jax.random.normal(k2, (B, M, C), dtype=jnp.float32)
    out = jax.block_until_ready(chamfer_loss(f, g))
    ref = jax.block_until_ready(_chamfer_ref(f, g))
    assert jnp.allclose(out, ref, rtol=1e-5, atol=1e-5), (out, ref)

    # Multi-tile case: exercises the running-min accumulation over the M grid
    # axis and the cross-N-tile min of the g->f partials.
    B2, N2, M2, C2 = 2, 256, 384, 3
    f2 = jax.random.normal(k3, (B2, N2, C2), dtype=jnp.float32)
    g2 = jax.random.normal(k4, (B2, M2, C2), dtype=jnp.float32)
    out2 = jax.block_until_ready(chamfer_loss(f2, g2, tile_n=128, tile_m=128))
    ref2 = jax.block_until_ready(_chamfer_ref(f2, g2))
    assert jnp.allclose(out2, ref2, rtol=1e-5, atol=1e-5), (out2, ref2)

    print("KERNEL_OK")
</pallas_src>

<mosaic_0001>
module attributes {stable_mosaic.version = 11 : i64} {
  func.func @_chamfer_kernel(%arg0: i32, %arg1: i32, %arg2: i32, %arg3: memref<1x16x3xf32, #tpu.memory_space<vmem>>, %arg4: memref<1x3x24xf32, #tpu.memory_space<vmem>>, %arg5: memref<1x16x1xf32, #tpu.memory_space<vmem>>, %arg6: memref<1x1x24xf32, #tpu.memory_space<vmem>>, %arg7: memref<1x16x1xf32, #tpu.memory_space<vmem>>, %arg8: memref<1x1x1x24xf32, #tpu.memory_space<vmem>>) attributes {dimension_semantics = [#tpu.dimension_semantics<parallel>, #tpu.dimension_semantics<parallel>, #tpu.dimension_semantics<arbitrary>], iteration_bounds = array<i64: 2, 1, 1>, scalar_prefetch = 0 : i64, scratch_operands = 0 : i64, tpu.core_type = #tpu.core_type<tc>, window_params = [{transform_indices = @transform_0, window_bounds = array<i64: 1, 16, 3>}, {transform_indices = @transform_1, window_bounds = array<i64: 1, 3, 24>}, {transform_indices = @transform_2, window_bounds = array<i64: 1, 16, 1>}, {transform_indices = @transform_3, window_bounds = array<i64: 1, 1, 24>}, {transform_indices = @transform_4, window_bounds = array<i64: 1, 16, 1>}, {transform_indices = @transform_5, window_bounds = array<i64: 1, 1, 1, 24>}]} {
    %c0 = arith.constant 0 : index
    %c0_0 = arith.constant 0 : index
    %c0_1 = arith.constant 0 : index
    %0 = vector.load %arg3[%c0, %c0_0, %c0_1] : memref<1x16x3xf32, #tpu.memory_space<vmem>>, vector<1x16x3xf32>
    %1 = vector.shape_cast %0 : vector<1x16x3xf32> to vector<16x3xf32>
    %cst = arith.constant -2.000000e+00 : f32
    %2 = vector.broadcast %cst : f32 to vector<16x3xf32>
    %3 = arith.mulf %1, %2 : vector<16x3xf32>
    %c0_2 = arith.constant 0 : index
    %c0_3 = arith.constant 0 : index
    %c0_4 = arith.constant 0 : index
    %4 = vector.load %arg4[%c0_2, %c0_3, %c0_4] : memref<1x3x24xf32, #tpu.memory_space<vmem>>, vector<1x3x24xf32>
    %5 = vector.shape_cast %4 : vector<1x3x24xf32> to vector<3x24xf32>
    %cst_5 = arith.constant dense<0.000000e+00> : vector<16x24xf32>
    %6 = tpu.matmul %3, %5, %cst_5 {dimension_numbers = #tpu.dot_dimension_numbers<[1], [0], [0], [1], [0, 0, 1, 1], [], []>} : vector<16x3xf32>, vector<3x24xf32>, vector<16x24xf32> -> vector<16x24xf32>
    %c0_6 = arith.constant 0 : index
    %c0_7 = arith.constant 0 : index
    %c0_8 = arith.constant 0 : index
    %7 = vector.load %arg5[%c0_6, %c0_7, %c0_8] : memref<1x16x1xf32, #tpu.memory_space<vmem>>, vector<1x16x1xf32>
    %8 = vector.shape_cast %7 : vector<1x16x1xf32> to vector<16x1xf32>
    %9 = vector.broadcast %8 : vector<16x1xf32> to vector<16x24xf32>
    %10 = arith.addf %6, %9 : vector<16x24xf32>
    %c0_9 = arith.constant 0 : index
    %c0_10 = arith.constant 0 : index
    %c0_11 = arith.constant 0 : index
    %11 = vector.load %arg6[%c0_9, %c0_10, %c0_11] : memref<1x1x24xf32, #tpu.memory_space<vmem>>, vector<1x1x24xf32>
    %12 = vector.shape_cast %11 : vector<1x1x24xf32> to vector<1x24xf32>
    %13 = vector.broadcast %12 : vector<1x24xf32> to vector<16x24xf32>
    %14 = arith.addf %10, %13 : vector<16x24xf32>
    %cst_12 = arith.constant dense<0x7F800000> : vector<24xf32>
    %15 = vector.multi_reduction <minimumf>, %14, %cst_12 [0] : vector<16x24xf32> to vector<24xf32>
    %16 = vector.shape_cast %15 : vector<24xf32> to vector<1x24xf32>
    %c0_13 = arith.constant 0 : index
    %c0_14 = arith.constant 0 : index
    %c0_15 = arith.constant 0 : index
    %c0_16 = arith.constant 0 : index
    %17 = vector.load %arg8[%c0_13, %c0_14, %c0_15, %c0_16] : memref<1x1x1x24xf32, #tpu.memory_space<vmem>>, vector<1x1x1x24xf32>
    %18 = vector.shape_cast %17 : vector<1x1x1x24xf32> to vector<1x24xf32>
    %19 = vector.shape_cast %16 : vector<1x24xf32> to vector<1x1x1x24xf32>
    tpu.vector_store %arg8[%c0_13, %c0_14, %c0_15, %c0_16], %19 {strides = array<i32>} : memref<1x1x1x24xf32, #tpu.memory_space<vmem>>, vector<1x1x1x24xf32>,
    %cst_17 = arith.constant dense<0x7F800000> : vector<16xf32>
    %20 = vector.multi_reduction <minimumf>, %14, %cst_17 [1] : vector<16x24xf32> to vector<16xf32>
    %21 = vector.shape_cast %20 : vector<16xf32> to vector<16x1xf32>
    %c0_i32 = arith.constant 0 : i32
    %22 = arith.cmpi eq, %arg2, %c0_i32 : i32
    %23 = arith.extui %22 : i1 to i32
    %c0_i32_18 = arith.constant 0 : i32
    %24 = arith.cmpi ne, %23, %c0_i32_18 : i32
    scf.if %24 {
      %c0_21 = arith.constant 0 : index
      %c0_22 = arith.constant 0 : index
      %c0_23 = arith.constant 0 : index
      %28 = vector.load %arg7[%c0_21, %c0_22, %c0_23] : memref<1x16x1xf32, #tpu.memory_space<vmem>>, vector<1x16x1xf32>
      %29 = vector.shape_cast %28 : vector<1x16x1xf32> to vector<16x1xf32>
      %30 = vector.shape_cast %21 : vector<16x1xf32> to vector<1x16x1xf32>
      tpu.vector_store %arg7[%c0_21, %c0_22, %c0_23], %30 {strides = array<i32>} : memref<1x16x1xf32, #tpu.memory_space<vmem>>, vector<1x16x1xf32>,
    } else {
    }
    %c0_i32_19 = arith.constant 0 : i32
    %25 = arith.cmpi sgt, %arg2, %c0_i32_19 : i32
    %26 = arith.extui %25 : i1 to i32
    %c0_i32_20 = arith.constant 0 : i32
    %27 = arith.cmpi ne, %26, %c0_i32_20 : i32
    scf.if %27 {
      %c0_21 = arith.constant 0 : index
      %c0_22 = arith.constant 0 : index
      %c0_23 = arith.constant 0 : index
      %28 = vector.load %arg7[%c0_21, %c0_22, %c0_23] : memref<1x16x1xf32, #tpu.memory_space<vmem>>, vector<1x16x1xf32>
      %29 = vector.shape_cast %28 : vector<1x16x1xf32> to vector<16x1xf32>
      %30 = arith.minimumf %29, %21 : vector<16x1xf32>
      %c0_24 = arith.constant 0 : index
      %c0_25 = arith.constant 0 : index
      %c0_26 = arith.constant 0 : index
      %31 = vector.load %arg7[%c0_24, %c0_25, %c0_26] : memref<1x16x1xf32, #tpu.memory_space<vmem>>, vector<1x16x1xf32>
      %32 = vector.shape_cast %31 : vector<1x16x1xf32> to vector<16x1xf32>
      %33 = vector.shape_cast %30 : vector<16x1xf32> to vector<1x16x1xf32>
      tpu.vector_store %arg7[%c0_24, %c0_25, %c0_26], %33 {strides = array<i32>} : memref<1x16x1xf32, #tpu.memory_space<vmem>>, vector<1x16x1xf32>,
    } else {
    }
    return
  }
  func.func @transform_0(%arg0: i32, %arg1: i32, %arg2: i32) -> (i32, i32, i32) {
    %c0_i32 = arith.constant 0 : i32
    %c0_i32_0 = arith.constant 0 : i32
    return %arg0, %arg1, %c0_i32 : i32, i32, i32
  }
  func.func @transform_1(%arg0: i32, %arg1: i32, %arg2: i32) -> (i32, i32, i32) {
    %c0_i32 = arith.constant 0 : i32
    %c0_i32_0 = arith.constant 0 : i32
    return %arg0, %c0_i32, %arg2 : i32, i32, i32
  }
  func.func @transform_2(%arg0: i32, %arg1: i32, %arg2: i32) -> (i32, i32, i32) {
    %c0_i32 = arith.constant 0 : i32
    %c0_i32_0 = arith.constant 0 : i32
    return %arg0, %arg1, %c0_i32 : i32, i32, i32
  }
  func.func @transform_3(%arg0: i32, %arg1: i32, %arg2: i32) -> (i32, i32, i32) {
    %c0_i32 = arith.constant 0 : i32
    %c0_i32_0 = arith.constant 0 : i32
    return %arg0, %c0_i32, %arg2 : i32, i32, i32
  }
  func.func @transform_4(%arg0: i32, %arg1: i32, %arg2: i32) -> (i32, i32, i32) {
    %c0_i32 = arith.constant 0 : i32
    %c0_i32_0 = arith.constant 0 : i32
    return %arg0, %arg1, %c0_i32 : i32, i32, i32
  }
  func.func @transform_5(%arg0: i32, %arg1: i32, %arg2: i32) -> (i32, i32, i32, i32) {
    %c0_i32 = arith.constant 0 : i32
    %c0_i32_0 = arith.constant 0 : i32
    return %arg0, %arg1, %c0_i32, %arg2 : i32, i32, i32, i32
  }
}

</mosaic_0001>

<bundles_post_ra>
// kernel: tpu_custom_call.1
= control target key start
LH: loop header
LB: loop body
LE: loop exit
PB: predicated region body
PF: predicated region fallthrough
CT: control target
= control target key end

     0   :  { %11 = vsyncpa [#allocation3], 0  ;;  %s953_s0 = inlined_call_operand.vmem [shape: f32[2,16,3], index: 0, kind: input, shape index: {}]   ;;  %s954_s1 = inlined_call_operand.vmem [shape: f32[2,3,24], index: 1, kind: input, shape index: {}]   ;;  %s955_s2 = inlined_call_operand.vmem [shape: f32[2,16,1], index: 2, kind: input, shape index: {}]   ;;  %s956_s3 = inlined_call_operand.vmem [shape: f32[2,1,24], index: 3, kind: input, shape index: {}]   ;;  %s957_s4 = inlined_call_operand.vmem [shape: f32[2,16,1], index: 4, kind: output, shape index: {0}]   ;;  %s958_s5 = inlined_call_operand.hbm [shape: f32[2,1,1,24], index: 5, kind: output, shape index: {1}]  }
   0x1   :  { %13 = vsyncpa [#allocation3 + $0x1], 0  ;;  %s839_s18 = smov 0   ;;  %s841_s19 = smov 0  }
   0x2   :  { %s843_s20 = smov 0   ;;  %s845_s21 = smov 0  }
   0x3   :  { %s847_s22 = smov 0   ;;  %s849_s23 = smov 0  }
   0x4 LB: > { %s649_s24 = sadd.s32 4294967295, %s806_s23   ;;  %s650_s25 = sadd.s32 4294967294, %s806_s23   ;;  %s806_s23 = sphi %s849_s23, %s19_s23   ;;  %s802_s22 = sphi %s847_s22, %s965_s22   ;;  %s798_s21 = sphi %s845_s21, %s964_s21   ;;  %s794_s20 = sphi %s843_s20, %s963_s20   ;;  %s790_s19 = sphi %s841_s19, %s962_s19   ;;  %s786_s18 = sphi %s839_s18, %s961_s18  }
   0x5   : > { %s38_s26 = sadd.s32 1, %s802_s22  ;;  %s189_s27 = sadd.s32 1, %s794_s20 }
   0x6   : > { %p40_p0 = scmp.ge.s32.totalorder %s38_s26, 2  ;;  %p199_p1 = scmp.ne.s32.totalorder %s794_s20, %s790_s19 }
   0x7   : > { %p200_p2 = scmp.eq.s32.totalorder %s649_s24, 1  ;;  %p205_p3 = scmp.ne.s32.totalorder %s790_s19, %s786_s18 }
   0x8   : > { %s967_s26 = smov (%p40_p0, %s38_s26), 0  ;;  %p206_p5 = scmp.eq.s32.totalorder %s650_s25, 1 }
   0x9   : > { %p879_p4 = por %p200_p2, %p199_p1  ;;  %s182_s29 = ssub.s32 %s802_s22, %s967_s26 }
   0xa   : > { %p653_p6 = scmp.ge.s32.totalorder %s806_s23, 1  ;;  %p187_p7 = scmp.eq.s32.totalorder %s182_s29, 0 }
   0xb   : > { %p886_p8 = por %p206_p5, %p205_p3  ;;  %p269_p9 = scmp.lt.s32.totalorder %s806_s23, 3 }
   0xc   : > { %s892_s6 = scalar_select %p187_p7, %s794_s20, %s189_s27  }
   0xd   : > { %p270_p10 = pnand %p653_p6, %p269_p9 }
   0xe   : > { %p332_p11 = scmp.lt.s32.totalorder (!%p270_p10), %s798_s21, 1  ;;  %s489_s11 = scalar_lea.hbm (!%p270_p10), %s958_s5, %s798_s21 }
   0xf   : > { %273 = sbr.rel (%p270_p10) target bundleno = 284 (0x11c), region = 36  ;;  %s493_s14 = sshll.u32 (!%p270_p10), %s489_s11, 4  ;;  %s494_s14 = int_to_ptr.hbm [resolvable:$true] %s493_s14 }
  0x10   : > { %s742_s16 = sshra.s32 (!%p270_p10), %s494_s14, 4  ;;  %s748_s25 = scalar_lea.hbm (!%p270_p10), %s958_s5, 2  ;;  %s743_s16 = int_to_ptr.hbm [resolvable:$true] %s742_s16 }
  0x11   : > { %s744_s17 = scalar_lea.hbm (!%p270_p10), %s743_s16, 1  ;;  %p749_p1 = scmp.lt.s32.totalorder (!%p270_p10), %s743_s16, %s958_s5 }
  0x12   : > { %p745_p12 = scmp.ne.s32.totalorder (!%p270_p10), %s743_s16, %s744_s17  ;;  %p750_p2 = scmp.lt.s32.totalorder (!%p270_p10), %s748_s25, %s744_s17 }
  0x14   : > { %v808_v0 = vmov 0   ;;  %s333_s7 = scalar_select %p332_p11, %s798_s21, 1  ;;  %vm398_vm0 = vcmask 1042432   ;;  %vm391_vm1 = vcmask 23552   ;;  %vm431_vm2 = vcmask 195584  }
  0x15   : > { %726 = vset.pattern.permute.xlu0 %v808_v0  ;;  %vm441_vm3 = vcmask 188416   ;;  %p746_p13 = pnand %p745_p12, %p879_p4  ;;  %p751_p3 = por %p750_p2, %p749_p1 }
  0x16   : > { %s656_s8 = sshll.u32 %s333_s7, 2  ;;  %s896_s9 = sshll.u32 %s333_s7, 4 }
  0x17   : > { %s347_s12 = scalar_lea.vmem %s954_s1, %s656_s8  ;;  %s339_s15 = scalar_lea.vmem %s953_s0, %s896_s9 }
  0x18   : > { %v378_v1 = vld [vmem:[%s347_s12] sm:$0x7]  ;;  %v375_v3 = vld [vmem:[%s339_s15 + $0x8] sm:$0xff]  ;;  %s356_s24 = scalar_lea.vmem %s955_s2, %s896_s9  ;;  %s363_s29 = scalar_lea.vmem %s956_s3, %s333_s7 }
  0x19   : > { %v374_v2 = vld [vmem:[%s339_s15] sm:$0xff]  ;;  %661 = vmatpush.msk.msra.mxu0 %vm398_vm0, %v378_v1  ;;  %669 = vmatpush.msk.msra.mxu1 %vm398_vm0, %v378_v1  ;;  %v377_v5 = vmul.f32 -2.0, %v375_v3  ;;  %v380_v7 = vld [vmem:[%s356_s24 + $0x8] sm:$0xff]  ;;  %s329_s7 = sand.u32 1, %s790_s19   ;;  %p747_p0 = pneg %p746_p13 }
  0x1a   : > { %v376_v4 = vmul.f32 -2.0, %v374_v2  ;;  %v379_v6 = vld [vmem:[%s356_s24] sm:$0xff]  ;;  %s330_s12 = scalar_lea.vmem [#allocation2], %s329_s7  ;;  %s475_s15 = scalar_lea.sflag [#allocation3], %s329_s7 }
  0x1b   : > { %383 = vperm.xlu0 %726, %v379_v6   ;;  %663 = vmatmul.msk.f32.vlgmr.msra.gmra.mxu1 %vm391_vm1, %v377_v5  ;;  %v727_v10 = vld [vmem:[%s363_s29] ss:$0 sm:$0xff]  ;;  %s491_s13 = sshll.u32 %s330_s12, 4  ;;  %p752_p5 = pnand %p751_p3, %p747_p0  ;;  %s492_s13 = int_to_ptr.vmem [resolvable:$true] %s491_s13 }
  0x1c   : > { %662 = vmatmul.msk.f32.vlgmr.msra.gmra.mxu0 %vm391_vm1, %v376_v4 }
  0x23   : > { %388 = vperm.xlu0 %726, %v380_v7  }
  0x8d   : > { %v384_v8 = vpop.permute.xlu0 %383 }
  0x95   : > { %v389_v9 = vpop.permute.xlu0 %388 }
  0x98   : > { %v422_v12 = vpop.f32.mrf.mxu1 }
  0x99   : > { %v419_v11 = vpop.f32.mrf.mxu0  ;;  %v423_v14 = vadd.f32 %v422_v12, %v389_v9 }
  0x9a   : > { %v420_v13 = vadd.f32 %v419_v11, %v384_v8 }
  0x9b   : > { %v430_v16 = vadd.f32 %v727_v10, %v423_v14 }
  0x9c   : > { %v429_v15 = vadd.f32 %v727_v10, %v420_v13 }
  0x9d   : > { %v433_v18 = vsel %vm431_vm2, %v430_v16, inf }
  0x9e   : > { %v432_v17 = vsel %vm431_vm2, %v429_v15, inf }
  0x9f   : > { %443 = vmin.xlane.f32.xlu1 %v432_v17  ;;  %v434_v19 = vmin.f32 %v432_v17, %v433_v18 }
  0xa1   : > { %v435_v20 = vrot.slane %v434_v19, 4 }
  0xa3   : > { %v436_v21 = vmin.f32 %v434_v19, %v435_v20 }
  0xa5   : > { %v437_v22 = vrot.slane %v436_v21, 2 }
  0xa7   : > { %445 = vmin.xlane.f32.xlu1 %v433_v18  ;;  %v438_v23 = vmin.f32 %v436_v21, %v437_v22 }
  0xa9   : > { %v439_v24 = vrot.slane %v438_v23, 1 }
  0xab   : > { %v440_v25 = vmin.f32 %v438_v23, %v439_v24 }
  0xad   : > { %442 = vst.msk [vmem:[%s330_s12] sm:$0x1] %vm441_vm3, %v440_v25 }
  0xae   : > { %755 = shalt.err (!%p752_p5)
}
  0xaf   : > { %670 = dma.vmem_to_hbm [thread:$0]  (%p879_p4), %s492_s13, 16, %s494_s14, %s475_s15   ;;  %vm451_vm4 = vcmask 7168  }
  0xb0   : > { %s372_s10 = scalar_lea.vmem %s957_s4, %s896_s9 }
 0x112   : > { %v444_v26 = vpop.xlane.xlu1 %443 }
 0x113   : > { %452 = vst.msk [vmem:[%s372_s10] sm:$0xff] %vm451_vm4, %v444_v26 }
 0x11a   : > { %v446_v27 = vpop.xlane.xlu1 %445 }
 0x11b   : > { %453 = vst.msk [vmem:[%s372_s10 + $0x8] sm:$0xff] %vm451_vm4, %v446_v27 }
 0x11c PF: > { %p676_p6 = scmp.ge.s32.totalorder %s806_s23, 2  ;;  %s517_s11 = sand.u32 1, %s786_s18  }
 0x11d   : > { %s518_s28 = scalar_lea.sflag [#allocation3], %s517_s11 }
 0x11e   : > { %p673_p7 = pnand %p676_p6, %p886_p8 }
 0x120   : > { %p674_p9 = pneg %p673_p7 }
 0x122   : > { %781 = dma.done.wait (%p674_p9), %s518_s28, 16  }
 0x123   : > { %783 = vsyncadd (%p674_p9), %s518_s28, 4294967280  ;;  %s19_s23 = sadd.s32 1, %s806_s23   ;;  %s961_s18 = smov %s790_s19 }
 0x124   : > { %p16_p4 = scmp.ge.s32.totalorder %s19_s23, 4   ;;  %s962_s19 = smov %s794_s20 }
 0x125   : > { %s963_s20 = smov %s892_s6  ;;  %s964_s21 = smov %s802_s22 }
 0x126   : > { %s965_s22 = smov %s967_s26  ;;  %18 = sbr.rel (!%p16_p4) target bundleno = 4 (0x4), region = 100 }
 0x12b   :  { %523 = vsyncpa [#allocation3], 1 }
 0x12c   :  { %525 = vsyncpa [#allocation3 + $0x1], 1 }

</bundles_post_ra>
